<compile_context>
chip_gen: v5e
topology: v5e:2x2
jax: 0.10.0
libtpu: 0.0.40
codegen_flags: <defaults>
</compile_context>

<pallas_src>
import jax
import jax.numpy as jnp
from jax import lax
from jax.experimental import pallas as pl
from jax.experimental.pallas import tpu as pltpu


# Config mirroring Slot_Slot_Contrastive_Loss.__init__ defaults.
TEMPERATURE = 0.1
BATCH_CONTRAST = True
_L2_EPS = 1e-12            # torch.nn.functional.normalize default eps
_BLOCK_BUDGET_BYTES = 4 << 20   # per-buffer budget for the frame block (double-buffered)


def slot_slot_contrastive_loss(slots: jax.Array,
                               *,
                               temperature: float = TEMPERATURE,
                               batch_contrast: bool = BATCH_CONTRAST,
                               mxu_dtype=jnp.float32) -> jax.Array:
    """Fused Pallas TPU kernel for Slot_Slot_Contrastive_Loss.forward(slots, _)."""
    assert slots.ndim == 4, "expected slots of shape (B, T, S, D)"
    B, T, S, D = slots.shape
    assert T >= 2, "need at least two frames for slot-slot contrast"

    mxu_dtype = jnp.dtype(mxu_dtype)

    # batch_contrast=True: one contrast group containing all B*S slots per frame.
    # batch_contrast=False: B independent groups of S slots.
    G = 1 if batch_contrast else B          # number of contrast groups (grid axis 0)
    B_blk = B if batch_contrast else 1      # batch rows per block
    n_cls = B_blk * S                       # number of "classes" N in the CE
    inv_temp = 1.0 / float(temperature)
    # CrossEntropyLoss(mean) with prob. targets divides by (#rows * spatial) = G*(T-1)*n_cls.
    scale = 1.0 / (G * (T - 1) * n_cls)
    # Safe to drop the max-subtraction in logsumexp: |ss| <= 1/temperature after L2-norm.
    use_max = inv_temp > 60.0

    # --- choose how many frames to process per grid step (amortize grid overhead) ---
    itemsize = jnp.dtype(slots.dtype).itemsize
    frame_bytes = B_blk * S * D * itemsize
    t_blk = 1
    for cand in range(1, T + 1):
        if T % cand == 0 and cand * frame_bytes <= _BLOCK_BUDGET_BYTES:
            t_blk = cand
    n_tb = T // t_blk                       # grid steps along the frame axis

    # VMEM budget: double-buffered input block + scratches + N x N logits headroom.
    vmem_needed = (2 * t_blk * frame_bytes
                   + 4 * n_cls * D
                   + 16 * n_cls
                   + 12 * n_cls * n_cls
                   + (2 << 20))
    vmem_limit = int(min(max(vmem_needed, 8 << 20), 64 << 20))

    def kernel(frames_ref, loss_ref, prev_ref, acc_lse_ref, acc_diag_ref):
        g = pl.program_id(0)
        t = pl.program_id(1)
        last_g = pl.num_programs(0) - 1
        last_t = pl.num_programs(1) - 1

        @pl.when((g == 0) & (t == 0))
        def _init_acc():
            acc_lse_ref[...] = jnp.zeros_like(acc_lse_ref)
            acc_diag_ref[...] = jnp.zeros_like(acc_diag_ref)

        def load_frame(k):
            # (B_blk, S, D) -> (n_cls, D): this *is* the `b t s d -> 1 t (b s) d`
            # batch-contrast rearrange, done in VMEM.  S is a multiple of 8 here so the
            # merge is sublane-tile aligned (no hidden relayout copy); pad S otherwise.
            return frames_ref[:, k].astype(jnp.float32).reshape(n_cls, D)

        def l2_normalize(x):
            # F.normalize(p=2, dim=-1, eps=1e-12): x / max(||x||, eps)
            sumsq = jnp.sum(x * x, axis=-1, keepdims=True)
            inv_n = 1.0 / jnp.maximum(jnp.sqrt(sumsq), _L2_EPS)
            return x * inv_n

        @pl.when(t == 0)
        def _init_prev():
            # First frame of this contrast group: normalize and pre-scale by 1/temp
            # (folding the temperature into one operand removes the N^2 logit scale).
            prev_ref[...] = l2_normalize(load_frame(0)) * inv_temp

        def process_pair(k):
            x2 = l2_normalize(load_frame(k))     # normalized new frame (unscaled)
            a = prev_ref[...]                    # normalized previous frame * (1/temp)
            if mxu_dtype == jnp.float32:
                am, bm = a, x2
            else:
                am = a.astype(mxu_dtype)
                bm = x2.astype(mxu_dtype)
            # MXU: ss[i, j] = <s1_i, s2_j> / temperature   (N x N logits, contract over D).
            ss = lax.dot_general(am, bm, (((1,), (1,)), ((), ())),
                                 preferred_element_type=jnp.float32)
            if use_max:
                m = jnp.max(ss, axis=0, keepdims=True)
                lse = m + jnp.log(jnp.sum(jnp.exp(ss - m), axis=0, keepdims=True))
            else:
                # |ss| <= 1/temperature, exp cannot overflow in f32.
                lse = jnp.log(jnp.sum(jnp.exp(ss), axis=0, keepdims=True))      # (1, N)
            # diag(ss) from the same (possibly rounded) operands the MXU saw.
            diag = jnp.sum(am.astype(jnp.float32) * bm.astype(jnp.float32),
                           axis=-1, keepdims=True)                              # (N, 1)
            acc_lse_ref[...] += lse
            acc_diag_ref[...] += diag
            # Carry: this frame becomes next pair's "s1" (pre-scaled by 1/temperature).
            prev_ref[...] = x2 * inv_temp

        # Process up to t_blk frame pairs in this grid step (unrolled).
        for k in range(t_blk):
            if k == 0:
                # The first frame of the very first block of a group has no predecessor.
                @pl.when(t > 0)
                def _pair0():
                    process_pair(0)
            else:
                process_pair(k)

        @pl.when((g == last_g) & (t == last_t))
        def _finalize():
            total_lse = jnp.sum(acc_lse_ref[...], keepdims=True)    # (1, 1)
            total_diag = jnp.sum(acc_diag_ref[...], keepdims=True)  # (1, 1)
            loss_ref[...] = (total_lse - total_diag) * scale

    out = pl.pallas_call(
        kernel,
        out_shape=jax.ShapeDtypeStruct((1, 1), jnp.float32),
        grid=(G, n_tb),
        in_specs=[
            # One block of t_blk consecutive frames, read once straight from raw slots.
            pl.BlockSpec((B_blk, t_blk, S, D), lambda g, t: (g, t, 0, 0)),
        ],
        out_specs=pl.BlockSpec((1, 1), lambda g, t: (0, 0)),
        scratch_shapes=[
            pltpu.VMEM((n_cls, D), jnp.float32),   # carried normalized prev frame * 1/temp
            pltpu.VMEM((1, n_cls), jnp.float32),   # per-column logsumexp accumulator
            pltpu.VMEM((n_cls, 1), jnp.float32),   # per-column diag accumulator
        ],
        compiler_params=pltpu.CompilerParams(
            # All steps feed resident carry/accumulator scratches -> sequential grid.
            dimension_semantics=("arbitrary", "arbitrary"),
            vmem_limit_bytes=vmem_limit),
    )(slots)

    return out[0, 0]


def reference_loss(slots, temperature, batch_contrast):
    """Pure-JAX reference mirroring the PyTorch forward."""
    x = slots / jnp.maximum(
        jnp.sqrt(jnp.sum(slots * slots, axis=-1, keepdims=True)), _L2_EPS)
    B, T, S, D = x.shape
    if batch_contrast:
        x = jnp.transpose(x, (1, 0, 2, 3)).reshape(1, T, B * S, D)
    s1, s2 = x[:, :-1], x[:, 1:]
    ss = jnp.einsum("btid,btjd->btij", s1, s2,
                    precision=lax.Precision.HIGHEST) / temperature
    Bc, Tc, N, _ = ss.shape
    ss = ss.reshape(Bc * Tc, N, N)
    logp = jax.nn.log_softmax(ss, axis=1)           # class dim = i (rows)
    diag = jnp.diagonal(logp, axis1=1, axis2=2)     # target = eye(N)
    return -jnp.mean(diag)


if __name__ == "__main__":
    # Small shapes consistent with the module: (batch, frames, slots, slot_dim).
    B, T, S, D = 2, 4, 8, 32
    slots = jax.random.normal(jax.random.PRNGKey(0), (B, T, S, D), dtype=jnp.float32)

    # Default config (batch_contrast=True), f32 MXU path.
    loss = jax.jit(slot_slot_contrastive_loss)(slots)
    jax.block_until_ready(loss)
    ref = reference_loss(slots, TEMPERATURE, True)
    assert loss.shape == ()
    assert bool(jnp.allclose(loss, ref, rtol=1e-3, atol=1e-3)), (loss, ref)

    # batch_contrast=False path (per-sample contrast groups).
    loss_nb = jax.jit(
        lambda x: slot_slot_contrastive_loss(x, batch_contrast=False))(slots)
    jax.block_until_ready(loss_nb)
    ref_nb = reference_loss(slots, TEMPERATURE, False)
    assert bool(jnp.allclose(loss_nb, ref_nb, rtol=1e-3, atol=1e-3)), (loss_nb, ref_nb)

    # bf16 MXU fast path (v6e/v7x native datapath); looser tolerance due to rounding.
    loss_bf16 = jax.jit(
        lambda x: slot_slot_contrastive_loss(x, mxu_dtype=jnp.bfloat16))(slots)
    jax.block_until_ready(loss_bf16)
    assert bool(jnp.allclose(loss_bf16, ref, rtol=2e-2, atol=2e-2)), (loss_bf16, ref)

    print("KERNEL_OK")
</pallas_src>

<mosaic_0001>
module attributes {stable_mosaic.version = 11 : i64} {
  func.func @kernel(%arg0: i32, %arg1: i32, %arg2: memref<2x4x8x32xf32, #tpu.memory_space<vmem>>, %arg3: memref<1x1xf32, #tpu.memory_space<vmem>>, %arg4: memref<16x32xf32, #tpu.memory_space<vmem>>, %arg5: memref<1x16xf32, #tpu.memory_space<vmem>>, %arg6: memref<16x1xf32, #tpu.memory_space<vmem>>) attributes {dimension_semantics = [#tpu.dimension_semantics<arbitrary>, #tpu.dimension_semantics<arbitrary>], iteration_bounds = array<i64: 1, 1>, scalar_prefetch = 0 : i64, scratch_operands = 3 : i64, tpu.core_type = #tpu.core_type<tc>, window_params = [{transform_indices = @transform_0, window_bounds = array<i64: 2, 4, 8, 32>}, {pipeline_mode = #tpu.pipeline_mode<synchronous>, transform_indices = @transform_1, window_bounds = array<i64: 1, 1>}]} {
    %c0_i32 = arith.constant 0 : i32
    %0 = arith.cmpi eq, %arg0, %c0_i32 : i32
    %c0_i32_0 = arith.constant 0 : i32
    %1 = arith.cmpi eq, %arg1, %c0_i32_0 : i32
    %2 = arith.andi %0, %1 : i1
    %3 = arith.extui %2 : i1 to i32
    %c0_i32_1 = arith.constant 0 : i32
    %4 = arith.cmpi ne, %3, %c0_i32_1 : i32
    scf.if %4 {
      %cst_73 = arith.constant 0.000000e+00 : f32
      %109 = vector.broadcast %cst_73 : f32 to vector<1x16xf32>
      %c0_74 = arith.constant 0 : index
      %c0_75 = arith.constant 0 : index
      %110 = vector.load %arg5[%c0_74, %c0_75] : memref<1x16xf32, #tpu.memory_space<vmem>>, vector<1x16xf32>
      tpu.vector_store %arg5[%c0_74, %c0_75], %109 {strides = array<i32>} : memref<1x16xf32, #tpu.memory_space<vmem>>, vector<1x16xf32>,
      %cst_76 = arith.constant 0.000000e+00 : f32
      %111 = vector.broadcast %cst_76 : f32 to vector<16x1xf32>
      %c0_77 = arith.constant 0 : index
      %c0_78 = arith.constant 0 : index
      %112 = vector.load %arg6[%c0_77, %c0_78] : memref<16x1xf32, #tpu.memory_space<vmem>>, vector<16x1xf32>
      tpu.vector_store %arg6[%c0_77, %c0_78], %111 {strides = array<i32>} : memref<16x1xf32, #tpu.memory_space<vmem>>, vector<16x1xf32>,
    } else {
    }
    %c0_i32_2 = arith.constant 0 : i32
    %5 = arith.cmpi eq, %arg1, %c0_i32_2 : i32
    %6 = arith.extui %5 : i1 to i32
    %c0_i32_3 = arith.constant 0 : i32
    %7 = arith.cmpi ne, %6, %c0_i32_3 : i32
    scf.if %7 {
      %c0_73 = arith.constant 0 : index
      %c0_74 = arith.constant 0 : index
      %c0_75 = arith.constant 0 : index
      %c0_76 = arith.constant 0 : index
      %109 = vector.load %arg2[%c0_73, %c0_74, %c0_75, %c0_76] : memref<2x4x8x32xf32, #tpu.memory_space<vmem>>, vector<2x1x8x32xf32>
      %110 = vector.shape_cast %109 : vector<2x1x8x32xf32> to vector<2x8x32xf32>
      %111 = vector.shape_cast %110 : vector<2x8x32xf32> to vector<16x32xf32>
      %112 = arith.mulf %111, %111 : vector<16x32xf32>
      %cst_77 = arith.constant dense<0.000000e+00> : vector<16xf32>
      %113 = vector.multi_reduction <add>, %112, %cst_77 [1] : vector<16x32xf32> to vector<16xf32>
      %114 = vector.shape_cast %113 : vector<16xf32> to vector<16x1xf32>
      %115 = math.sqrt %114 : vector<16x1xf32>
      %cst_78 = arith.constant 9.99999996E-13 : f32
      %116 = vector.broadcast %cst_78 : f32 to vector<16x1xf32>
      %117 = arith.maximumf %115, %116 : vector<16x1xf32>
      %cst_79 = arith.constant 1.000000e+00 : f32
      %118 = vector.broadcast %cst_79 : f32 to vector<16x1xf32>
      %119 = arith.divf %118, %117 : vector<16x1xf32>
      %120 = vector.broadcast %119 : vector<16x1xf32> to vector<16x32xf32>
      %121 = arith.mulf %111, %120 : vector<16x32xf32>
      %cst_80 = arith.constant 1.000000e+01 : f32
      %122 = vector.broadcast %cst_80 : f32 to vector<16x32xf32>
      %123 = arith.mulf %121, %122 : vector<16x32xf32>
      %c0_81 = arith.constant 0 : index
      %c0_82 = arith.constant 0 : index
      %124 = vector.load %arg4[%c0_81, %c0_82] : memref<16x32xf32, #tpu.memory_space<vmem>>, vector<16x32xf32>
      tpu.vector_store %arg4[%c0_81, %c0_82], %123 {strides = array<i32>} : memref<16x32xf32, #tpu.memory_space<vmem>>, vector<16x32xf32>,
    } else {
    }
    %c0_i32_4 = arith.constant 0 : i32
    %8 = arith.cmpi sgt, %arg1, %c0_i32_4 : i32
    %9 = arith.extui %8 : i1 to i32
    %c0_i32_5 = arith.constant 0 : i32
    %10 = arith.cmpi ne, %9, %c0_i32_5 : i32
    scf.if %10 {
      %c0_73 = arith.constant 0 : index
      %c0_74 = arith.constant 0 : index
      %c0_75 = arith.constant 0 : index
      %c0_76 = arith.constant 0 : index
      %109 = vector.load %arg2[%c0_73, %c0_74, %c0_75, %c0_76] : memref<2x4x8x32xf32, #tpu.memory_space<vmem>>, vector<2x1x8x32xf32>
      %110 = vector.shape_cast %109 : vector<2x1x8x32xf32> to vector<2x8x32xf32>
      %111 = vector.shape_cast %110 : vector<2x8x32xf32> to vector<16x32xf32>
      %112 = arith.mulf %111, %111 : vector<16x32xf32>
      %cst_77 = arith.constant dense<0.000000e+00> : vector<16xf32>
      %113 = vector.multi_reduction <add>, %112, %cst_77 [1] : vector<16x32xf32> to vector<16xf32>
      %114 = vector.shape_cast %113 : vector<16xf32> to vector<16x1xf32>
      %115 = math.sqrt %114 : vector<16x1xf32>
      %cst_78 = arith.constant 9.99999996E-13 : f32
      %116 = vector.broadcast %cst_78 : f32 to vector<16x1xf32>
      %117 = arith.maximumf %115, %116 : vector<16x1xf32>
      %cst_79 = arith.constant 1.000000e+00 : f32
      %118 = vector.broadcast %cst_79 : f32 to vector<16x1xf32>
      %119 = arith.divf %118, %117 : vector<16x1xf32>
      %120 = vector.broadcast %119 : vector<16x1xf32> to vector<16x32xf32>
      %121 = arith.mulf %111, %120 : vector<16x32xf32>
      %c0_80 = arith.constant 0 : index
      %c0_81 = arith.constant 0 : index
      %122 = vector.load %arg4[%c0_80, %c0_81] : memref<16x32xf32, #tpu.memory_space<vmem>>, vector<16x32xf32>
      %cst_82 = arith.constant dense<0.000000e+00> : vector<16x16xf32>
      %123 = tpu.matmul %122, %121, %cst_82 {dimension_numbers = #tpu.dot_dimension_numbers<[1], [1], [0], [0], [0, 0, 1, 0], [], []>} : vector<16x32xf32>, vector<16x32xf32>, vector<16x16xf32> -> vector<16x16xf32>
      %124 = math.exp %123 : vector<16x16xf32>
      %cst_83 = arith.constant dense<0.000000e+00> : vector<16xf32>
      %125 = vector.multi_reduction <add>, %124, %cst_83 [0] : vector<16x16xf32> to vector<16xf32>
      %126 = vector.shape_cast %125 : vector<16xf32> to vector<1x16xf32>
      %127 = math.log %126 : vector<1x16xf32>
      %128 = arith.mulf %122, %121 : vector<16x32xf32>
      %cst_84 = arith.constant dense<0.000000e+00> : vector<16xf32>
      %129 = vector.multi_reduction <add>, %128, %cst_84 [1] : vector<16x32xf32> to vector<16xf32>
      %130 = vector.shape_cast %129 : vector<16xf32> to vector<16x1xf32>
      %c0_85 = arith.constant 0 : index
      %c0_86 = arith.constant 0 : index
      %131 = vector.load %arg5[%c0_85, %c0_86] : memref<1x16xf32, #tpu.memory_space<vmem>>, vector<1x16xf32>
      %132 = arith.addf %131, %127 : vector<1x16xf32>
      %c0_87 = arith.constant 0 : index
      %c0_88 = arith.constant 0 : index
      %133 = vector.load %arg5[%c0_87, %c0_88] : memref<1x16xf32, #tpu.memory_space<vmem>>, vector<1x16xf32>
      tpu.vector_store %arg5[%c0_87, %c0_88], %132 {strides = array<i32>} : memref<1x16xf32, #tpu.memory_space<vmem>>, vector<1x16xf32>,
      %c0_89 = arith.constant 0 : index
      %c0_90 = arith.constant 0 : index
      %134 = vector.load %arg6[%c0_89, %c0_90] : memref<16x1xf32, #tpu.memory_space<vmem>>, vector<16x1xf32>
      %135 = arith.addf %134, %130 : vector<16x1xf32>
      %c0_91 = arith.constant 0 : index
      %c0_92 = arith.constant 0 : index
      %136 = vector.load %arg6[%c0_91, %c0_92] : memref<16x1xf32, #tpu.memory_space<vmem>>, vector<16x1xf32>
      tpu.vector_store %arg6[%c0_91, %c0_92], %135 {strides = array<i32>} : memref<16x1xf32, #tpu.memory_space<vmem>>, vector<16x1xf32>,
      %cst_93 = arith.constant 1.000000e+01 : f32
      %137 = vector.broadcast %cst_93 : f32 to vector<16x32xf32>
      %138 = arith.mulf %121, %137 : vector<16x32xf32>
      %c0_94 = arith.constant 0 : index
      %c0_95 = arith.constant 0 : index
      %139 = vector.load %arg4[%c0_94, %c0_95] : memref<16x32xf32, #tpu.memory_space<vmem>>, vector<16x32xf32>
      tpu.vector_store %arg4[%c0_94, %c0_95], %138 {strides = array<i32>} : memref<16x32xf32, #tpu.memory_space<vmem>>, vector<16x32xf32>,
    } else {
    }
    %c0 = arith.constant 0 : index
    %c1 = arith.constant 1 : index
    %c0_6 = arith.constant 0 : index
    %c0_7 = arith.constant 0 : index
    %11 = vector.load %arg2[%c0, %c1, %c0_6, %c0_7] : memref<2x4x8x32xf32, #tpu.memory_space<vmem>>, vector<2x1x8x32xf32>
    %12 = vector.shape_cast %11 : vector<2x1x8x32xf32> to vector<2x8x32xf32>
    %13 = vector.shape_cast %12 : vector<2x8x32xf32> to vector<16x32xf32>
    %14 = arith.mulf %13, %13 : vector<16x32xf32>
    %cst = arith.constant dense<0.000000e+00> : vector<16xf32>
    %15 = vector.multi_reduction <add>, %14, %cst [1] : vector<16x32xf32> to vector<16xf32>
    %16 = vector.shape_cast %15 : vector<16xf32> to vector<16x1xf32>
    %17 = math.sqrt %16 : vector<16x1xf32>
    %cst_8 = arith.constant 9.99999996E-13 : f32
    %18 = vector.broadcast %cst_8 : f32 to vector<16x1xf32>
    %19 = arith.maximumf %17, %18 : vector<16x1xf32>
    %cst_9 = arith.constant 1.000000e+00 : f32
    %20 = vector.broadcast %cst_9 : f32 to vector<16x1xf32>
    %21 = arith.divf %20, %19 : vector<16x1xf32>
    %22 = vector.broadcast %21 : vector<16x1xf32> to vector<16x32xf32>
    %23 = arith.mulf %13, %22 : vector<16x32xf32>
    %c0_10 = arith.constant 0 : index
    %c0_11 = arith.constant 0 : index
    %24 = vector.load %arg4[%c0_10, %c0_11] : memref<16x32xf32, #tpu.memory_space<vmem>>, vector<16x32xf32>
    %cst_12 = arith.constant dense<0.000000e+00> : vector<16x16xf32>
    %25 = tpu.matmul %24, %23, %cst_12 {dimension_numbers = #tpu.dot_dimension_numbers<[1], [1], [0], [0], [0, 0, 1, 0], [], []>} : vector<16x32xf32>, vector<16x32xf32>, vector<16x16xf32> -> vector<16x16xf32>
    %26 = math.exp %25 : vector<16x16xf32>
    %cst_13 = arith.constant dense<0.000000e+00> : vector<16xf32>
    %27 = vector.multi_reduction <add>, %26, %cst_13 [0] : vector<16x16xf32> to vector<16xf32>
    %28 = vector.shape_cast %27 : vector<16xf32> to vector<1x16xf32>
    %29 = math.log %28 : vector<1x16xf32>
    %30 = arith.mulf %24, %23 : vector<16x32xf32>
    %cst_14 = arith.constant dense<0.000000e+00> : vector<16xf32>
    %31 = vector.multi_reduction <add>, %30, %cst_14 [1] : vector<16x32xf32> to vector<16xf32>
    %32 = vector.shape_cast %31 : vector<16xf32> to vector<16x1xf32>
    %c0_15 = arith.constant 0 : index
    %c0_16 = arith.constant 0 : index
    %33 = vector.load %arg5[%c0_15, %c0_16] : memref<1x16xf32, #tpu.memory_space<vmem>>, vector<1x16xf32>
    %34 = arith.addf %33, %29 : vector<1x16xf32>
    %c0_17 = arith.constant 0 : index
    %c0_18 = arith.constant 0 : index
    %35 = vector.load %arg5[%c0_17, %c0_18] : memref<1x16xf32, #tpu.memory_space<vmem>>, vector<1x16xf32>
    tpu.vector_store %arg5[%c0_17, %c0_18], %34 {strides = array<i32>} : memref<1x16xf32, #tpu.memory_space<vmem>>, vector<1x16xf32>,
    %c0_19 = arith.constant 0 : index
    %c0_20 = arith.constant 0 : index
    %36 = vector.load %arg6[%c0_19, %c0_20] : memref<16x1xf32, #tpu.memory_space<vmem>>, vector<16x1xf32>
    %37 = arith.addf %36, %32 : vector<16x1xf32>
    %c0_21 = arith.constant 0 : index
    %c0_22 = arith.constant 0 : index
    %38 = vector.load %arg6[%c0_21, %c0_22] : memref<16x1xf32, #tpu.memory_space<vmem>>, vector<16x1xf32>
    tpu.vector_store %arg6[%c0_21, %c0_22], %37 {strides = array<i32>} : memref<16x1xf32, #tpu.memory_space<vmem>>, vector<16x1xf32>,
    %cst_23 = arith.constant 1.000000e+01 : f32
    %39 = vector.broadcast %cst_23 : f32 to vector<16x32xf32>
    %40 = arith.mulf %23, %39 : vector<16x32xf32>
    %c0_24 = arith.constant 0 : index
    %c0_25 = arith.constant 0 : index
    %41 = vector.load %arg4[%c0_24, %c0_25] : memref<16x32xf32, #tpu.memory_space<vmem>>, vector<16x32xf32>
    tpu.vector_store %arg4[%c0_24, %c0_25], %40 {strides = array<i32>} : memref<16x32xf32, #tpu.memory_space<vmem>>, vector<16x32xf32>,
    %c0_26 = arith.constant 0 : index
    %c2 = arith.constant 2 : index
    %c0_27 = arith.constant 0 : index
    %c0_28 = arith.constant 0 : index
    %42 = vector.load %arg2[%c0_26, %c2, %c0_27, %c0_28] : memref<2x4x8x32xf32, #tpu.memory_space<vmem>>, vector<2x1x8x32xf32>
    %43 = vector.shape_cast %42 : vector<2x1x8x32xf32> to vector<2x8x32xf32>
    %44 = vector.shape_cast %43 : vector<2x8x32xf32> to vector<16x32xf32>
    %45 = arith.mulf %44, %44 : vector<16x32xf32>
    %cst_29 = arith.constant dense<0.000000e+00> : vector<16xf32>
    %46 = vector.multi_reduction <add>, %45, %cst_29 [1] : vector<16x32xf32> to vector<16xf32>
    %47 = vector.shape_cast %46 : vector<16xf32> to vector<16x1xf32>
    %48 = math.sqrt %47 : vector<16x1xf32>
    %cst_30 = arith.constant 9.99999996E-13 : f32
    %49 = vector.broadcast %cst_30 : f32 to vector<16x1xf32>
    %50 = arith.maximumf %48, %49 : vector<16x1xf32>
    %cst_31 = arith.constant 1.000000e+00 : f32
    %51 = vector.broadcast %cst_31 : f32 to vector<16x1xf32>
    %52 = arith.divf %51, %50 : vector<16x1xf32>
    %53 = vector.broadcast %52 : vector<16x1xf32> to vector<16x32xf32>
    %54 = arith.mulf %44, %53 : vector<16x32xf32>
    %c0_32 = arith.constant 0 : index
    %c0_33 = arith.constant 0 : index
    %55 = vector.load %arg4[%c0_32, %c0_33] : memref<16x32xf32, #tpu.memory_space<vmem>>, vector<16x32xf32>
    %cst_34 = arith.constant dense<0.000000e+00> : vector<16x16xf32>
    %56 = tpu.matmul %55, %54, %cst_34 {dimension_numbers = #tpu.dot_dimension_numbers<[1], [1], [0], [0], [0, 0, 1, 0], [], []>} : vector<16x32xf32>, vector<16x32xf32>, vector<16x16xf32> -> vector<16x16xf32>
    %57 = math.exp %56 : vector<16x16xf32>
    %cst_35 = arith.constant dense<0.000000e+00> : vector<16xf32>
    %58 = vector.multi_reduction <add>, %57, %cst_35 [0] : vector<16x16xf32> to vector<16xf32>
    %59 = vector.shape_cast %58 : vector<16xf32> to vector<1x16xf32>
    %60 = math.log %59 : vector<1x16xf32>
    %61 = arith.mulf %55, %54 : vector<16x32xf32>
    %cst_36 = arith.constant dense<0.000000e+00> : vector<16xf32>
    %62 = vector.multi_reduction <add>, %61, %cst_36 [1] : vector<16x32xf32> to vector<16xf32>
    %63 = vector.shape_cast %62 : vector<16xf32> to vector<16x1xf32>
    %c0_37 = arith.constant 0 : index
    %c0_38 = arith.constant 0 : index
    %64 = vector.load %arg5[%c0_37, %c0_38] : memref<1x16xf32, #tpu.memory_space<vmem>>, vector<1x16xf32>
    %65 = arith.addf %64, %60 : vector<1x16xf32>
    %c0_39 = arith.constant 0 : index
    %c0_40 = arith.constant 0 : index
    %66 = vector.load %arg5[%c0_39, %c0_40] : memref<1x16xf32, #tpu.memory_space<vmem>>, vector<1x16xf32>
    tpu.vector_store %arg5[%c0_39, %c0_40], %65 {strides = array<i32>} : memref<1x16xf32, #tpu.memory_space<vmem>>, vector<1x16xf32>,
    %c0_41 = arith.constant 0 : index
    %c0_42 = arith.constant 0 : index
    %67 = vector.load %arg6[%c0_41, %c0_42] : memref<16x1xf32, #tpu.memory_space<vmem>>, vector<16x1xf32>
    %68 = arith.addf %67, %63 : vector<16x1xf32>
    %c0_43 = arith.constant 0 : index
    %c0_44 = arith.constant 0 : index
    %69 = vector.load %arg6[%c0_43, %c0_44] : memref<16x1xf32, #tpu.memory_space<vmem>>, vector<16x1xf32>
    tpu.vector_store %arg6[%c0_43, %c0_44], %68 {strides = array<i32>} : memref<16x1xf32, #tpu.memory_space<vmem>>, vector<16x1xf32>,
    %cst_45 = arith.constant 1.000000e+01 : f32
    %70 = vector.broadcast %cst_45 : f32 to vector<16x32xf32>
    %71 = arith.mulf %54, %70 : vector<16x32xf32>
    %c0_46 = arith.constant 0 : index
    %c0_47 = arith.constant 0 : index
    %72 = vector.load %arg4[%c0_46, %c0_47] : memref<16x32xf32, #tpu.memory_space<vmem>>, vector<16x32xf32>
    tpu.vector_store %arg4[%c0_46, %c0_47], %71 {strides = array<i32>} : memref<16x32xf32, #tpu.memory_space<vmem>>, vector<16x32xf32>,
    %c0_48 = arith.constant 0 : index
    %c3 = arith.constant 3 : index
    %c0_49 = arith.constant 0 : index
    %c0_50 = arith.constant 0 : index
    %73 = vector.load %arg2[%c0_48, %c3, %c0_49, %c0_50] : memref<2x4x8x32xf32, #tpu.memory_space<vmem>>, vector<2x1x8x32xf32>
    %74 = vector.shape_cast %73 : vector<2x1x8x32xf32> to vector<2x8x32xf32>
    %75 = vector.shape_cast %74 : vector<2x8x32xf32> to vector<16x32xf32>
    %76 = arith.mulf %75, %75 : vector<16x32xf32>
    %cst_51 = arith.constant dense<0.000000e+00> : vector<16xf32>
    %77 = vector.multi_reduction <add>, %76, %cst_51 [1] : vector<16x32xf32> to vector<16xf32>
    %78 = vector.shape_cast %77 : vector<16xf32> to vector<16x1xf32>
    %79 = math.sqrt %78 : vector<16x1xf32>
    %cst_52 = arith.constant 9.99999996E-13 : f32
    %80 = vector.broadcast %cst_52 : f32 to vector<16x1xf32>
    %81 = arith.maximumf %79, %80 : vector<16x1xf32>
    %cst_53 = arith.constant 1.000000e+00 : f32
    %82 = vector.broadcast %cst_53 : f32 to vector<16x1xf32>
    %83 = arith.divf %82, %81 : vector<16x1xf32>
    %84 = vector.broadcast %83 : vector<16x1xf32> to vector<16x32xf32>
    %85 = arith.mulf %75, %84 : vector<16x32xf32>
    %c0_54 = arith.constant 0 : index
    %c0_55 = arith.constant 0 : index
    %86 = vector.load %arg4[%c0_54, %c0_55] : memref<16x32xf32, #tpu.memory_space<vmem>>, vector<16x32xf32>
    %cst_56 = arith.constant dense<0.000000e+00> : vector<16x16xf32>
    %87 = tpu.matmul %86, %85, %cst_56 {dimension_numbers = #tpu.dot_dimension_numbers<[1], [1], [0], [0], [0, 0, 1, 0], [], []>} : vector<16x32xf32>, vector<16x32xf32>, vector<16x16xf32> -> vector<16x16xf32>
    %88 = math.exp %87 : vector<16x16xf32>
    %cst_57 = arith.constant dense<0.000000e+00> : vector<16xf32>
    %89 = vector.multi_reduction <add>, %88, %cst_57 [0] : vector<16x16xf32> to vector<16xf32>
    %90 = vector.shape_cast %89 : vector<16xf32> to vector<1x16xf32>
    %91 = math.log %90 : vector<1x16xf32>
    %92 = arith.mulf %86, %85 : vector<16x32xf32>
    %cst_58 = arith.constant dense<0.000000e+00> : vector<16xf32>
    %93 = vector.multi_reduction <add>, %92, %cst_58 [1] : vector<16x32xf32> to vector<16xf32>
    %94 = vector.shape_cast %93 : vector<16xf32> to vector<16x1xf32>
    %c0_59 = arith.constant 0 : index
    %c0_60 = arith.constant 0 : index
    %95 = vector.load %arg5[%c0_59, %c0_60] : memref<1x16xf32, #tpu.memory_space<vmem>>, vector<1x16xf32>
    %96 = arith.addf %95, %91 : vector<1x16xf32>
    %c0_61 = arith.constant 0 : index
    %c0_62 = arith.constant 0 : index
    %97 = vector.load %arg5[%c0_61, %c0_62] : memref<1x16xf32, #tpu.memory_space<vmem>>, vector<1x16xf32>
    tpu.vector_store %arg5[%c0_61, %c0_62], %96 {strides = array<i32>} : memref<1x16xf32, #tpu.memory_space<vmem>>, vector<1x16xf32>,
    %c0_63 = arith.constant 0 : index
    %c0_64 = arith.constant 0 : index
    %98 = vector.load %arg6[%c0_63, %c0_64] : memref<16x1xf32, #tpu.memory_space<vmem>>, vector<16x1xf32>
    %99 = arith.addf %98, %94 : vector<16x1xf32>
    %c0_65 = arith.constant 0 : index
    %c0_66 = arith.constant 0 : index
    %100 = vector.load %arg6[%c0_65, %c0_66] : memref<16x1xf32, #tpu.memory_space<vmem>>, vector<16x1xf32>
    tpu.vector_store %arg6[%c0_65, %c0_66], %99 {strides = array<i32>} : memref<16x1xf32, #tpu.memory_space<vmem>>, vector<16x1xf32>,
    %cst_67 = arith.constant 1.000000e+01 : f32
    %101 = vector.broadcast %cst_67 : f32 to vector<16x32xf32>
    %102 = arith.mulf %85, %101 : vector<16x32xf32>
    %c0_68 = arith.constant 0 : index
    %c0_69 = arith.constant 0 : index
    %103 = vector.load %arg4[%c0_68, %c0_69] : memref<16x32xf32, #tpu.memory_space<vmem>>, vector<16x32xf32>
    tpu.vector_store %arg4[%c0_68, %c0_69], %102 {strides = array<i32>} : memref<16x32xf32, #tpu.memory_space<vmem>>, vector<16x32xf32>,
    %c0_i32_70 = arith.constant 0 : i32
    %104 = arith.cmpi eq, %arg0, %c0_i32_70 : i32
    %c0_i32_71 = arith.constant 0 : i32
    %105 = arith.cmpi eq, %arg1, %c0_i32_71 : i32
    %106 = arith.andi %104, %105 : i1
    %107 = arith.extui %106 : i1 to i32
    %c0_i32_72 = arith.constant 0 : i32
    %108 = arith.cmpi ne, %107, %c0_i32_72 : i32
    scf.if %108 {
      %c0_73 = arith.constant 0 : index
      %c0_74 = arith.constant 0 : index
      %109 = vector.load %arg5[%c0_73, %c0_74] : memref<1x16xf32, #tpu.memory_space<vmem>>, vector<1x16xf32>
      %110 = vector.shape_cast %109 : vector<1x16xf32> to vector<1x1x16xf32>
      %cst_75 = arith.constant dense<0.000000e+00> : vector<1xf32>
      %111 = vector.multi_reduction <add>, %110, %cst_75 [1, 2] : vector<1x1x16xf32> to vector<1xf32>
      %112 = vector.shape_cast %111 : vector<1xf32> to vector<1x1x1xf32>
      %113 = vector.extract %112[0, 0, 0] : f32 from vector<1x1x1xf32>
      %114 = vector.broadcast %113 : f32 to vector<1x1xf32>
      %c0_76 = arith.constant 0 : index
      %c0_77 = arith.constant 0 : index
      %115 = vector.load %arg6[%c0_76, %c0_77] : memref<16x1xf32, #tpu.memory_space<vmem>>, vector<16x1xf32>
      %116 = vector.shape_cast %115 : vector<16x1xf32> to vector<1x16x1xf32>
      %cst_78 = arith.constant dense<0.000000e+00> : vector<1xf32>
      %117 = vector.multi_reduction <add>, %116, %cst_78 [1, 2] : vector<1x16x1xf32> to vector<1xf32>
      %118 = vector.shape_cast %117 : vector<1xf32> to vector<1x1x1xf32>
      %119 = vector.extract %118[0, 0, 0] : f32 from vector<1x1x1xf32>
      %120 = vector.broadcast %119 : f32 to vector<1x1xf32>
      %121 = arith.subf %114, %120 : vector<1x1xf32>
      %cst_79 = arith.constant 0.020833334 : f32
      %122 = vector.broadcast %cst_79 : f32 to vector<1x1xf32>
      %123 = arith.mulf %121, %122 : vector<1x1xf32>
      %c0_80 = arith.constant 0 : index
      %c0_81 = arith.constant 0 : index
      %124 = vector.load %arg3[%c0_80, %c0_81] : memref<1x1xf32, #tpu.memory_space<vmem>>, vector<1x1xf32>
      tpu.vector_store %arg3[%c0_80, %c0_81], %123 {strides = array<i32>} : memref<1x1xf32, #tpu.memory_space<vmem>>, vector<1x1xf32>,
    } else {
    }
    return
  }
  func.func @transform_0(%arg0: i32, %arg1: i32) -> (i32, i32, i32, i32) {
    %c0_i32 = arith.constant 0 : i32
    %c0_i32_0 = arith.constant 0 : i32
    %c0_i32_1 = arith.constant 0 : i32
    return %arg0, %arg1, %c0_i32, %c0_i32_0 : i32, i32, i32, i32
  }
  func.func @transform_1(%arg0: i32, %arg1: i32) -> (i32, i32) {
    %c0_i32 = arith.constant 0 : i32
    %c0_i32_0 = arith.constant 0 : i32
    %c0_i32_1 = arith.constant 0 : i32
    return %c0_i32, %c0_i32_0 : i32, i32
  }
}

</mosaic_0001>

<bundles_post_ra>
// kernel: slot_slot_contrastive_loss.1
= control target key start
LH: loop header
LB: loop body
LE: loop exit
PB: predicated region body
PF: predicated region fallthrough
CT: control target
= control target key end

     0   :  { %6 = vsyncpa [#allocation6], 0  ;;  %s1230_s0 = inlined_call_operand.hbm [shape: f32[2,4,8,32], index: 0, kind: input, shape index: {}]   ;;  %s1231_s1 = inlined_call_operand.hbm [shape: f32[1,1], index: 1, kind: output, shape index: {}]  }
   0x1   :  { %7 = vsyncpa [#allocation7], 0  ;;  %s12_s8 = sshll.u32 %s1230_s0, 4  ;;  %s870_s9 = smov [#allocation5]   ;;  %s13_s8 = int_to_ptr.hbm [resolvable:$true] %s12_s8 }
   0x2   :  { %s14_s10 = sshll.u32 %s870_s9, 4  ;;  %s871_s11 = smov 128   ;;  %s15_s10 = int_to_ptr.vmem [resolvable:$true] %s14_s10 }
   0x3   :  { %s872_s12 = smov 8  }
   0x4   :  { %20 = dma.hbm_to_vmem [thread:$0]  %s13_s8, 1024, %s15_s10, [#allocation6], %s871_s11, %s871_s11, %s872_s12  }
   0x5   :  { %866 = dma.done.wait [#allocation6], 1024  }
   0x6   :  { %867 = vsyncadd [#allocation6], 4294966272  ;;  %vm43_vm0 = vcmask 261120   ;;  %v888_v0 = vld [vmem:[#allocation5 + $0x30] sm:$0xff]  ;;  %v890_v1 = vld [vmem:[#allocation5 + $0x28] sm:$0xff]  ;;  %s874_s14 = smov [#allocation8]  }
   0x7   :  { %v892_v2 = vld [vmem:[#allocation5] sm:$0xff]  ;;  %v411_v3 = vmul.f32 %v888_v0, %v888_v0  ;;  %v265_v4 = vmul.f32 %v890_v1, %v890_v1  ;;  %v900_v6 = vld [vmem:[#allocation5 + $0x10] sm:$0xff]  ;;  %v902_v7 = vld [vmem:[#allocation5 + $0x8] sm:$0xff]  ;;  %s729_s15 = sshll.u32 %s874_s14, 4  ;;  %s731_s18 = sshll.u32 %s1231_s1, 4  ;;  %s730_s15 = int_to_ptr.vmem [resolvable:$true] %s729_s15  ;;  %s732_s18 = int_to_ptr.hbm [resolvable:$true] %s731_s18 }
   0x8   :  { %v41_v5 = vmul.f32 %v892_v2, %v892_v2  ;;  %v907_v11 = vld [vmem:[#allocation5 + $0x20] sm:$0xff]  ;;  %v410_v12 = vmul.f32 %v900_v6, %v900_v6  ;;  %v264_v13 = vmul.f32 %v902_v7, %v902_v7  ;;  %v918_v18 = vld [vmem:[#allocation5 + $0x18] sm:$0xff] }
   0x9   :  { %v415_v8 = vsel %vm43_vm0, %v411_v3, 0.0  ;;  %v270_v9 = vsel %vm43_vm0, %v265_v4, 0.0  ;;  %v42_v14 = vmul.f32 %v907_v11, %v907_v11  ;;  %v920_v19 = vld [vmem:[#allocation5 + $0x38] sm:$0xff]  ;;  %v552_v20 = vmul.f32 %v918_v18, %v918_v18 }
   0xa   :  { %v44_v10 = vsel %vm43_vm0, %v41_v5, 0.0  ;;  %416 = vadd.xlane.f32.xlu2 %v415_v8  ;;  %271 = vadd.xlane.f32.xlu1 %v270_v9  ;;  %v412_v15 = vsel %vm43_vm0, %v410_v12, 0.0  ;;  %v267_v16 = vsel %vm43_vm0, %v264_v13, 0.0  ;;  %v553_v21 = vmul.f32 %v920_v19, %v920_v19 }
   0xb   :  { %45 = vadd.xlane.f32.xlu0 %v44_v10  ;;  %v47_v17 = vsel %vm43_vm0, %v42_v14, 0.0  ;;  %v554_v22 = vsel %vm43_vm0, %v552_v20, 0.0 }
   0xc   :  { %v557_v23 = vsel %vm43_vm0, %v553_v21, 0.0 }
  0x12   :  { %413 = vadd.xlane.f32.xlu2 %v412_v15  ;;  %268 = vadd.xlane.f32.xlu1 %v267_v16 }
  0x13   :  { %48 = vadd.xlane.f32.xlu0 %v47_v17 }
  0x1a   :  { %555 = vadd.xlane.f32.xlu1 %v554_v22 }
  0x1b   :  { %558 = vadd.xlane.f32.xlu0 %v557_v23 }
  0x7d   :  { %v928_v24 = vpop.xlane.xlu2 %416  ;;  %v930_v25 = vpop.xlane.xlu1 %271 }
  0x7e   :  { %768 = vrsqrt.f32 %v928_v24  ;;  %v933_v26 = vpop.xlane.xlu0 %45  ;;  %vm437_vm1 = vcmp.eq.f32.partialorder %v928_v24, inf  ;;  %vm439_vm2 = vcmp.eq.f32.partialorder %v928_v24, 0.0  ;;  %v440_v42 = vand.u32 2147483648, %v928_v24 }
  0x7f   :  { %770 = vrsqrt.f32 %v930_v25  ;;  %vm292_vm3 = vcmp.eq.f32.partialorder %v930_v25, inf  ;;  %vm294_vm4 = vcmp.eq.f32.partialorder %v930_v25, 0.0  ;;  %v295_v46 = vand.u32 2147483648, %v930_v25 }
  0x80   :  { %772 = vrsqrt.f32 %v933_v26  ;;  %vm57_vm5 = vcmp.eq.f32.partialorder %v933_v26, inf  ;;  %vm59_vm6 = vcmp.eq.f32.partialorder %v933_v26, 0.0  ;;  %v60_v53 = vand.u32 2147483648, %v933_v26 }
  0x84   :  { %v769_v27 = vpop.eup %768 }
  0x85   :  { %v771_v28 = vpop.eup %770  ;;  %v431_v29 = vmul.f32 %v769_v27, %v928_v24  ;;  %v938_v30 = vpop.xlane.xlu2 %413 }
  0x86   :  { %v940_v31 = vpop.xlane.xlu1 %268  ;;  %v773_v32 = vpop.eup %772  ;;  %v286_v33 = vmul.f32 %v771_v28, %v930_v25  ;;  %774 = vrsqrt.f32 %v938_v30  ;;  %v428_v60 = vand.u32 2147483648, %v938_v30  ;;  %vm425_vm7 = vcmp.eq.f32.partialorder %v938_v30, inf }
  0x87   :  { %v944_v34 = vpop.xlane.xlu0 %48  ;;  %v432_v35 = vmul.f32 %v769_v27, %v431_v29  ;;  %v51_v36 = vmul.f32 %v773_v32, %v933_v26  ;;  %776 = vrsqrt.f32 %v940_v31  ;;  %v283_v63 = vand.u32 2147483648, %v940_v31 }
  0x88   :  { %v287_v37 = vmul.f32 %v771_v28, %v286_v33  ;;  %778 = vrsqrt.f32 %v944_v34  ;;  %vm427_vm8 = vcmp.eq.f32.partialorder %v938_v30, 0.0  ;;  %vm280_vm9 = vcmp.eq.f32.partialorder %v940_v31, inf }
  0x89   :  { %v433_v38 = vmul.f32 0.5, %v432_v35  ;;  %v52_v39 = vmul.f32 %v773_v32, %v51_v36  ;;  %vm282_vm10 = vcmp.eq.f32.partialorder %v940_v31, 0.0  ;;  %vm69_vm11 = vcmp.eq.f32.partialorder %v944_v34, inf }
  0x8a   :  { %v288_v40 = vmul.f32 0.5, %v287_v37  ;;  %vm71_vm12 = vcmp.eq.f32.partialorder %v944_v34, 0.0  ;;  %v72_v35 = vand.u32 2147483648, %v944_v34 }
  0x8b   :  { %v434_v41 = vsub.f32 1.5, %v433_v38  ;;  %v53_v43 = vmul.f32 0.5, %v52_v39 }
  0x8c   :  { %v775_v44 = vpop.eup %774  ;;  %v289_v45 = vsub.f32 1.5, %v288_v40 }
  0x8d   :  { %v777_v47 = vpop.eup %776  ;;  %v435_v48 = vmul.f32 %v769_v27, %v434_v41  ;;  %v54_v49 = vsub.f32 1.5, %v53_v43  ;;  %v419_v50 = vmul.f32 %v775_v44, %v938_v30 }
  0x8e   :  { %v958_v51 = vpop.xlane.xlu1 %555  ;;  %v290_v52 = vmul.f32 %v771_v28, %v289_v45  ;;  %v274_v54 = vmul.f32 %v777_v47, %v940_v31  ;;  %v779_v56 = vpop.eup %778 }
  0x8f   :  { %780 = vrsqrt.f32 %v958_v51  ;;  %v963_v55 = vpop.xlane.xlu0 %558  ;;  %v436_v57 = vmul.f32 %v435_v48, %v928_v24  ;;  %v55_v58 = vmul.f32 %v773_v32, %v54_v49  ;;  %v420_v59 = vmul.f32 %v775_v44, %v419_v50 }
  0x90   :  { %v291_v61 = vmul.f32 %v290_v52, %v930_v25  ;;  %v275_v62 = vmul.f32 %v777_v47, %v274_v54  ;;  %v63_v3 = vmul.f32 %v779_v56, %v944_v34  ;;  %782 = vrsqrt.f32 %v963_v55 }
  0x91   :  { %v438_v4 = vsel %vm437_vm1, %v928_v24, %v436_v57  ;;  %v56_v5 = vmul.f32 %v55_v58, %v933_v26  ;;  %v421_v8 = vmul.f32 0.5, %v420_v59  ;;  %vm567_vm13 = vcmp.eq.f32.partialorder %v958_v51, inf }
  0x92   :  { %v441_v9 = vsel %vm439_vm2, %v440_v42, %v438_v4  ;;  %v293_v10 = vsel %vm292_vm3, %v930_v25, %v291_v61  ;;  %v276_v12 = vmul.f32 0.5, %v275_v62  ;;  %v64_v13 = vmul.f32 %v779_v56, %v63_v3 }
  0x93   :  { %v984_v14 = vmax.f32 %v441_v9, 1e-12  ;;  %v296_v15 = vsel %vm294_vm4, %v295_v46, %v293_v10  ;;  %v58_v16 = vsel %vm57_vm5, %v933_v26, %v56_v5  ;;  %v422_v17 = vsub.f32 1.5, %v421_v8 }
  0x94   :  { %v991_v21 = vmax.f32 %v296_v15, 1e-12  ;;  %v61_v22 = vsel %vm59_vm6, %v60_v53, %v58_v16  ;;  %v277_v23 = vsub.f32 1.5, %v276_v12  ;;  %v65_v24 = vmul.f32 0.5, %v64_v13 }
  0x95   :  { %v781_v20 = vpop.eup %780  ;;  %v995_v27 = vmax.f32 %v61_v22, 1e-12  ;;  %v423_v28 = vmul.f32 %v775_v44, %v422_v17  ;;  %vm569_vm14 = vcmp.eq.f32.partialorder %v958_v51, 0.0  ;;  %v570_v42 = vand.u32 2147483648, %v958_v51 }
  0x96   :  { %v561_v25 = vmul.f32 %v781_v20, %v958_v51  ;;  %784 = vrcp.f32 %v991_v21  ;;  %v278_v29 = vmul.f32 %v777_v47, %v277_v23  ;;  %v66_v32 = vsub.f32 1.5, %v65_v24  ;;  %v783_v33 = vpop.eup %782 }
  0x97   :  { %786 = vrcp.f32 %v984_v14  ;;  %v424_v26 = vmul.f32 %v423_v28, %v938_v30  ;;  %v573_v39 = vmul.f32 %v783_v33, %v963_v55  ;;  %vm579_vm15 = vcmp.eq.f32.partialorder %v963_v55, inf }
  0x98   :  { %v562_v36 = vmul.f32 %v781_v20, %v561_v25  ;;  %v279_v37 = vmul.f32 %v278_v29, %v940_v31  ;;  %v67_v38 = vmul.f32 %v779_v56, %v66_v32  ;;  %788 = vrcp.f32 %v995_v27 }
  0x99   :  { %v426_v40 = vsel %vm425_vm7, %v938_v30, %v424_v26  ;;  %v574_v46 = vmul.f32 %v783_v33, %v573_v39  ;;  %vm581_vm1 = vcmp.eq.f32.partialorder %v963_v55, 0.0  ;;  %v323_v54 = vand.u32 2147483647, %v991_v21 }
  0x9a   :  { %v563_v41 = vmul.f32 0.5, %v562_v36  ;;  %v429_v43 = vsel %vm427_vm8, %v428_v60, %v426_v40  ;;  %v281_v44 = vsel %vm280_vm9, %v940_v31, %v279_v37  ;;  %v68_v45 = vmul.f32 %v67_v38, %v944_v34 }
  0x9b   :  { %v1019_v47 = vmax.f32 %v429_v43, 1e-12  ;;  %v284_v48 = vsel %vm282_vm10, %v283_v63, %v281_v44  ;;  %v575_v53 = vmul.f32 0.5, %v574_v46  ;;  %v582_v58 = vand.u32 2147483648, %v963_v55 }
  0x9c   :  { %v564_v49 = vsub.f32 1.5, %v563_v41  ;;  %v785_v50 = vpop.eup %784  ;;  %v1024_v52 = vmax.f32 %v284_v48, 1e-12  ;;  %v70_v30 = vsel %vm69_vm11, %v944_v34, %v68_v45  ;;  %vm319_vm2 = vweird.f32 %v991_v21 }
  0x9d   :  { %v787_v56 = vpop.eup %786  ;;  %v73_v31 = vsel %vm71_vm12, %v72_v35, %v70_v30  ;;  %v315_v59 = vmul.f32 %v785_v50, %v991_v21  ;;  %v576_v61 = vsub.f32 1.5, %v575_v53  ;;  %v325_v3 = vand.u32 2147483648, %v991_v21 }
  0x9e   :  { %v565_v57 = vmul.f32 %v781_v20, %v564_v49  ;;  %790 = vrcp.f32 %v1024_v52  ;;  %v1036_v60 = vmax.f32 %v73_v31, 1e-12  ;;  %v1039_v62 = vpop.eup %788  ;;  %vm320_vm3 = vweird.f32 %v785_v50 }
  0x9f   :  { %792 = vrcp.f32 %v1019_v47  ;;  %v316_v34 = vsub.f32 1.0, %v315_v59  ;;  %v577_v4 = vmul.f32 %v783_v33, %v576_v61  ;;  %vm1044_vm4 = vcmp.eq.f32.partialorder %v323_v54, 8.507059e+37  ;;  %vm321_vm6 = vmor %vm319_vm2, %vm320_vm3 }
  0xa0   :  { %v566_v63 = vmul.f32 %v565_v57, %v958_v51  ;;  %v460_v8 = vmul.f32 %v787_v56, %v984_v14  ;;  %794 = vrcp.f32 %v1036_v60  ;;  %v468_v12 = vand.u32 2147483647, %v984_v14 }
  0xa1   :  { %v317_v10 = vmul.f32 %v785_v50, %v316_v34  ;;  %v77_v13 = vmul.f32 %v1039_v62, %v995_v27  ;;  %v578_v16 = vmul.f32 %v577_v4, %v963_v55  ;;  %v326_v22 = vor.u32 1.1754944e-38, %v325_v3 }
  0xa2   :  { %v568_v9 = vsel %vm567_vm13, %v958_v51, %v566_v63  ;;  %v461_v17 = vsub.f32 1.0, %v460_v8  ;;  %vm464_vm5 = vweird.f32 %v984_v14  ;;  %v470_v23 = vand.u32 2147483648, %v984_v14 }
  0xa3   :  { %v571_v15 = vsel %vm569_vm14, %v570_v42, %v568_v9  ;;  %v318_v20 = vadd.f32 %v785_v50, %v317_v10  ;;  %v580_v25 = vsel %vm579_vm15, %v963_v55, %v578_v16  ;;  %vm465_vm7 = vweird.f32 %v787_v56 }
  0xa4   :  { %v791_v24 = vpop.eup %790  ;;  %v1061_v28 = vmax.f32 %v571_v15, 1e-12  ;;  %v462_v51 = vmul.f32 %v787_v56, %v461_v17  ;;  %v583_v32 = vsel %vm581_vm1, %v582_v58, %v580_v25  ;;  %vm1071_vm8 = vcmp.eq.f32.partialorder %v468_v12, 8.507059e+37  ;;  %vm466_vm9 = vmor %vm464_vm5, %vm465_vm7 }
  0xa5   :  { %v793_v29 = vpop.eup %792  ;;  %v322_v33 = vsel %vm321_vm6, %v785_v50, %v318_v20  ;;  %v300_v35 = vmul.f32 %v791_v24, %v1024_v52  ;;  %v1076_v36 = vmax.f32 %v583_v32, 1e-12  ;;  %v308_v38 = vand.u32 2147483647, %v1024_v52 }
  0xa6   :  { %v327_v37 = vsel %vm1044_vm4, %v326_v22, %v322_v33  ;;  %v463_v21 = vadd.f32 %v787_v56, %v462_v51  ;;  %v1081_v39 = vpop.eup %794  ;;  %v471_v40 = vor.u32 1.1754944e-38, %v470_v23  ;;  %vm304_vm10 = vweird.f32 %v1024_v52 }
  0xa7   :  { %v1084_v55 = vmul.f32 %v327_v37, %v890_v1  ;;  %v301_v41 = vsub.f32 1.0, %v300_v35  ;;  %796 = vrcp.f32 %v1076_v36  ;;  %v310_v43 = vand.u32 2147483648, %v1024_v52 }
  0xa8   :  { %v467_v42 = vsel %vm466_vm9, %v787_v56, %v463_v21  ;;  %v445_v44 = vmul.f32 %v793_v29, %v1019_v47  ;;  %798 = vrcp.f32 %v1061_v28  ;;  %vm305_vm11 = vweird.f32 %v791_v24 }
  0xa9   :  { %745 = vmatpush.xpose.msk.msra.mxu0 %vm43_vm0, %v1084_v55  ;;  %757 = vmatpush.xpose.msk.msra.mxu3 %vm43_vm0, %v1084_v55  ;;  %v472_v1 = vsel %vm1071_vm8, %v471_v40, %v467_v42  ;;  %v302_v14 = vmul.f32 %v791_v24, %v301_v41  ;;  %v92_v45 = vmul.f32 %v1081_v39, %v1036_v60  ;;  %vm1104_vm12 = vcmp.eq.f32.partialorder %v308_v38, 8.507059e+37  ;;  %vm306_vm14 = vmor %vm304_vm10, %vm305_vm11 }
  0xaa   :  { %v1102_v46 = vmul.f32 %v472_v1, %v888_v0  ;;  %v446_v49 = vsub.f32 1.0, %v445_v44  ;;  %vm449_vm13 = vweird.f32 %v1019_v47  ;;  %v455_v30 = vand.u32 2147483648, %v1019_v47 }
  0xab   :  { %v303_v50 = vadd.f32 %v791_v24, %v302_v14  ;;  %v78_v53 = vsub.f32 1.0, %v77_v13  ;;  %v311_v54 = vor.u32 1.1754944e-38, %v310_v43  ;;  %vm450_vm15 = vweird.f32 %v793_v29 }
  0xac   :  { %749 = vmatpush.xpose.msk.msra.mxu1 %vm43_vm0, %v1102_v46  ;;  %v447_v0 = vmul.f32 %v793_v29, %v446_v49  ;;  %v453_v56 = vand.u32 2147483647, %v1019_v47  ;;  %vm81_vm1 = vweird.f32 %v995_v27  ;;  %vm82_vm2 = vweird.f32 %v1039_v62  ;;  %vm451_vm3 = vmor %vm449_vm13, %vm450_vm15 }
  0xad   :  { %v307_v31 = vsel %vm306_vm14, %v791_v24, %v303_v50  ;;  %v79_v57 = vmul.f32 %v1039_v62, %v78_v53  ;;  %v797_v58 = vpop.eup %796  ;;  %v85_v52 = vand.u32 2147483647, %v995_v27  ;;  %v87_v63 = vand.u32 2147483648, %v995_v27  ;;  %vm83_vm5 = vmor %vm81_vm1, %vm82_vm2 }
  0xae   :  { %v312_v59 = vsel %vm1104_vm12, %v311_v54, %v307_v31  ;;  %v448_v61 = vadd.f32 %v793_v29, %v447_v0  ;;  %v1122_v34 = vpop.eup %798  ;;  %v456_v4 = vor.u32 1.1754944e-38, %v455_v30  ;;  %v602_v8 = vmul.f32 %v797_v58, %v1076_v36 }
  0xaf   :  { %v1125_v3 = vmul.f32 %v312_v59, %v902_v7  ;;  %v80_v5 = vadd.f32 %v1039_v62, %v79_v57  ;;  %vm454_vm4 = vcmp.eq.f32.partialorder %v453_v56, 8.507059e+37  ;;  %v88_v10 = vor.u32 1.1754944e-38, %v87_v63 }
  0xb0   :  { %v452_v9 = vsel %vm451_vm3, %v793_v29, %v448_v61  ;;  %vm86_vm6 = vcmp.eq.f32.partialorder %v85_v52, 8.507059e+37  ;;  %v603_v12 = vsub.f32 1.0, %v602_v8  ;;  %vm607_vm7 = vweird.f32 %v797_v58 }
  0xb1   :  { %746 = vmatpush.xpose.msk.msra.mxu0 %vm43_vm0, %v1125_v3  ;;  %758 = vmatpush.xpose.msk.msra.mxu3 %vm43_vm0, %v1125_v3  ;;  %v457_v7 = vsel %vm454_vm4, %v456_v4, %v452_v9  ;;  %v84_v47 = vsel %vm83_vm5, %v1039_v62, %v80_v5  ;;  %v612_v27 = vand.u32 2147483648, %v1076_v36  ;;  %v610_v20 = vand.u32 2147483647, %v1076_v36 }
  0xb2   :  { %v1139_v13 = vmul.f32 %v457_v7, %v900_v6  ;;  %v89_v15 = vsel %vm86_vm6, %v88_v10, %v84_v47  ;;  %v604_v17 = vmul.f32 %v797_v58, %v603_v12  ;;  %v93_v22 = vsub.f32 1.0, %v92_v45 }
  0xb3   :  { %v106_v16 = vmul.f32 %v89_v15, %v892_v2  ;;  %vm606_vm8 = vweird.f32 %v1076_v36  ;;  %vm97_vm9 = vweird.f32 %v1081_v39  ;;  %v100_v24 = vand.u32 2147483647, %v1036_v60 }
  0xb4   :  { %750 = vmatpush.xpose.msk.msra.mxu1 %vm43_vm0, %v1139_v13  ;;  %v605_v6 = vadd.f32 %v797_v58, %v604_v17  ;;  %v94_v23 = vmul.f32 %v1081_v39, %v93_v22  ;;  %vm608_vm10 = vmor %vm606_vm8, %vm607_vm7  ;;  %v613_v25 = vor.u32 1.1754944e-38, %v612_v27  ;;  %v102_v2 = vand.u32 2147483648, %v1036_v60 }
  0xb5   :  { %v108_v62 = vmul.f32 10.0, %v106_v16  ;;  %v587_v51 = vmul.f32 %v1122_v34, %v1061_v28  ;;  %vm611_vm11 = vcmp.eq.f32.partialorder %v610_v20, 8.507059e+37  ;;  %vm96_vm12 = vweird.f32 %v1036_v60 }
  0xb6   :  { %v609_v29 = vsel %vm608_vm10, %v797_v58, %v605_v6  ;;  %v95_v32 = vadd.f32 %v1081_v39, %v94_v23  ;;  %vm98_vm13 = vmor %vm96_vm12, %vm97_vm9  ;;  %v103_v26 = vor.u32 1.1754944e-38, %v102_v2  ;;  %vm101_vm14 = vcmp.eq.f32.partialorder %v100_v24, 8.507059e+37 }
  0xb7   :  { %110 = vst.msk [vmem:[#allocation2] sm:$0xff] %vm43_vm0, %v108_v62  ;;  %v614_v33 = vsel %vm611_vm11, %v613_v25, %v609_v29  ;;  %v588_v35 = vsub.f32 1.0, %v587_v51  ;;  %v597_v21 = vand.u32 2147483648, %v1061_v28  ;;  %vm592_vm15 = vweird.f32 %v1122_v34 }
  0xb8   :  { %v1159_v36 = vmul.f32 %v614_v33, %v920_v19  ;;  %v99_v37 = vsel %vm98_vm13, %v1081_v39, %v95_v32  ;;  %v595_v60 = vand.u32 2147483647, %v1061_v28  ;;  %v403_v41 = vmul.f32 10.0, %v1125_v3 }
  0xb9   :  { %v104_v38 = vsel %vm101_vm14, %v103_v26, %v99_v37  ;;  %v589_v40 = vmul.f32 %v1122_v34, %v588_v35  ;;  %vm33_vm1 = vcmask 7168   ;;  %vm591_vm2 = vweird.f32 %v1061_v28 }
  0xba   :  { %753 = vmatpush.xpose.msk.msra.mxu2 %vm43_vm0, %v1159_v36  ;;  %v107_v19 = vmul.f32 %v104_v38, %v907_v11  ;;  %v873_v42 = vmov 0.0   ;;  %vm593_vm3 = vmor %vm591_vm2, %vm592_vm15  ;;  %v598_v44 = vor.u32 1.1754944e-38, %v597_v21  ;;  %vm596_vm4 = vcmp.eq.f32.partialorder %v595_v60, 8.507059e+37 }
  0xbb   :  { %v590_v39 = vadd.f32 %v1122_v34, %v589_v40  ;;  %34 = vst.msk [vmem:[#allocation4] sm:$0xff] %vm33_vm1, %v873_v42  ;;  %v545_v49 = vmul.f32 10.0, %v1139_v13  ;;  %v404_v50 = vmul.f32 10.0, %v1084_v55  ;;  %v546_v57 = vmul.f32 10.0, %v1102_v46 }
  0xbc   :  { %v109_v43 = vmul.f32 10.0, %v107_v19  ;;  %35 = vst.msk [vmem:[#allocation4 + $0x8] sm:$0xff] %vm33_vm1, %v873_v42  ;;  %vm372_vm5 = vcmask 130048   ;;  %vm722_vm6 = vcmask 0  }
  0xbd   :  { %v594_v14 = vsel %vm593_vm3, %v1122_v34, %v590_v39  ;;  %v688_v34 = vmul.f32 10.0, %v1159_v36 }
  0xbe   :  { %v331_v1 = vld [vmem:[#allocation2] sm:$0xff]  ;;  %v599_v28 = vsel %vm596_vm4, %v598_v44, %v594_v14  ;;  %111 = vst.msk [vmem:[#allocation2 + $0x8] sm:$0xff] %vm43_vm0, %v109_v43 }
  0xbf   :  { %747 = vmatmul.msk.f32.vlgmr.msra.gmra.mxu0 %vm43_vm0, %v331_v1  ;;  %405 = vst.msk [vmem:[#allocation2] sm:$0xff] %vm43_vm0, %v403_v41  ;;  %v384_v11 = vmul.f32 %v331_v1, %v1125_v3  ;;  %v616_v45 = vmul.f32 %v599_v28, %v918_v18 }
  0xc1   :  { %v386_v48 = vsel %vm43_vm0, %v384_v11, 0.0  ;;  %754 = vmatpush.xpose.msk.msra.mxu2 %vm43_vm0, %v616_v45  ;;  %v687_v31 = vmul.f32 10.0, %v616_v45 }
  0xc2   :  { %387 = vadd.xlane.f32.xlu2 %v386_v48  ;;  %v396_v8 = vld [vmem:[#allocation4] sm:$0xff] }
  0xc3   :  { %v397_v10 = vld [vmem:[#allocation4 + $0x8] sm:$0xff] }
  0xc5   :  { %v332_v53 = vld [vmem:[#allocation2 + $0x8] sm:$0xff] }
  0xc6   :  { %v476_v30 = vld [vmem:[#allocation2] sm:$0xff]  ;;  %748 = vmatmul.msk.f32.vlgmr.msra.gmra.mxu3 %vm43_vm0, %v332_v53  ;;  %406 = vst.msk [vmem:[#allocation2 + $0x8] sm:$0xff] %vm43_vm0, %v404_v50  ;;  %v385_v18 = vmul.f32 %v332_v53, %v1084_v55 }
  0xc7   :  { %751 = vmatmul.msk.f32.vlgmr.msra.gmra.mxu1 %vm43_vm0, %v476_v30  ;;  %547 = vst.msk [vmem:[#allocation2] sm:$0xff] %vm43_vm0, %v545_v49  ;;  %v528_v54 = vmul.f32 %v476_v30, %v1139_v13 }
  0xc8   :  { %v389_v56 = vsel %vm43_vm0, %v385_v18, 0.0 }
  0xc9   :  { %v530_v0 = vsel %vm43_vm0, %v528_v54, 0.0  ;;  %390 = vadd.xlane.f32.xlu0 %v389_v56 }
  0xca   :  { %531 = vadd.xlane.f32.xlu1 %v530_v0 }
  0xcd   :  { %v477_v59 = vld [vmem:[#allocation2 + $0x8] sm:$0xff] }
  0xce   :  { %v618_v58 = vld [vmem:[#allocation2] sm:$0xff]  ;;  %548 = vst.msk [vmem:[#allocation2 + $0x8] sm:$0xff] %vm43_vm0, %v546_v57  ;;  %v529_v55 = vmul.f32 %v477_v59, %v1102_v46 }
  0xcf   :  { %755 = vmatmul.msk.f32.vlgmr.msra.gmra.mxu2 %vm43_vm0, %v618_v58  ;;  %689 = vst.msk [vmem:[#allocation2] sm:$0xff] %vm43_vm0, %v687_v31  ;;  %v670_v61 = vmul.f32 %v618_v58, %v616_v45  ;;  %752 = vmatmul.msk.f32.gmra.mxu1 %vm43_vm0, %v477_v59 }
  0xd0   :  { %v533_v63 = vsel %vm43_vm0, %v529_v55, 0.0 }
  0xd1   :  { %v672_v52 = vsel %vm43_vm0, %v670_v61, 0.0  ;;  %534 = vadd.xlane.f32.xlu2 %v533_v63 }
  0xd2   :  { %673 = vadd.xlane.f32.xlu0 %v672_v52 }
  0xd5   :  { %v619_v3 = vld [vmem:[#allocation2 + $0x8] sm:$0xff] }
  0xd6   :  { %690 = vst.msk [vmem:[#allocation2 + $0x8] sm:$0xff] %vm43_vm0, %v688_v34  ;;  %v671_v4 = vmul.f32 %v619_v3, %v1159_v36 }
  0xd7   :  { %756 = vmatmul.msk.f32.gmra.mxu2 %vm43_vm0, %v619_v3 }
  0xd8   :  { %v675_v5 = vsel %vm43_vm0, %v671_v4, 0.0  ;;  %vm31_vm0 = vcmask 122880  }
  0xd9   :  { %676 = vadd.xlane.f32.xlu1 %v675_v5  ;;  %32 = vst.msk [vmem:[#allocation3] sm:$0x1] %vm31_vm0, %v873_v42 }
 0x135   :  { %v388_v46 = vpop.xlane.xlu2 %387 }
 0x136   :  { %v398_v9 = vadd.f32 %v396_v8, %v388_v46  ;;  %v392_v46 = vld [vmem:[#allocation3] sm:$0x1] }
 0x138   :  { %401 = vst.msk [vmem:[#allocation4] sm:$0xff] %vm33_vm1, %v398_v9 }
 0x13c   :  { %v391_v7 = vpop.xlane.xlu0 %390  ;;  %v362_v16 = vpop.f32.mrf.mxu0 }
 0x13d   :  { %v532_v47 = vpop.xlane.xlu1 %531  ;;  %v399_v13 = vadd.f32 %v397_v10, %v391_v7  ;;  %v368_v17 = vmul.f32 1.442695, %v362_v16 }
 0x13f   :  { %v539_v12 = vld [vmem:[#allocation4] sm:$0xff]  ;;  %402 = vst.msk [vmem:[#allocation4 + $0x8] sm:$0xff] %vm33_vm1, %v399_v13  ;;  %800 = vpow2.f32 %v368_v17 }
 0x140   :  { %v541_v15 = vadd.f32 %v539_v12, %v532_v47 }
 0x142   :  { %543 = vst.msk [vmem:[#allocation4] sm:$0xff] %vm33_vm1, %v541_v15 }
 0x144   :  { %v507_v27 = vpop.f32.mrf.mxu1  ;;  %v535_v20 = vpop.xlane.xlu2 %534 }
 0x145   :  { %v513_v62 = vmul.f32 1.442695, %v507_v27  ;;  %v674_v23 = vpop.xlane.xlu0 %673  ;;  %v801_v33 = vpop.eup %800 }
 0x146   :  { %v540_v22 = vld [vmem:[#allocation4 + $0x8] sm:$0xff]  ;;  %v373_v40 = vsel %vm372_vm5, %v801_v33, 0.0 }
 0x147   :  { %v542_v6 = vadd.f32 %v540_v22, %v535_v20  ;;  %802 = vpow2.f32 %v513_v62 }
 0x149   :  { %v681_v24 = vld [vmem:[#allocation4] sm:$0xff]  ;;  %544 = vst.msk [vmem:[#allocation4 + $0x8] sm:$0xff] %vm33_vm1, %v542_v6  ;;  %v365_v2 = vpop.f32.mrf.mxu3 }
 0x14a   :  { %v683_v25 = vadd.f32 %v681_v24, %v674_v23  ;;  %v370_v51 = vmul.f32 1.442695, %v365_v2 }
 0x14c   :  { %685 = vst.msk [vmem:[#allocation4] sm:$0xff] %vm33_vm1, %v683_v25  ;;  %v510_v29 = vpop.f32.mrf.mxu1  ;;  %804 = vpow2.f32 %v370_v51  ;;  %v677_v26 = vpop.xlane.xlu1 %676 }
 0x14d   :  { %v515_v32 = vmul.f32 1.442695, %v510_v29  ;;  %v803_v37 = vpop.eup %802 }
 0x14e   :  { %v517_v39 = vsel %vm372_vm5, %v803_v37, 0.0 }
 0x14f   :  { %806 = vpow2.f32 %v515_v32 }
 0x150   :  { %v682_v35 = vld [vmem:[#allocation4 + $0x8] sm:$0xff] }
 0x151   :  { %v684_v21 = vadd.f32 %v682_v35, %v677_v26 }
 0x152   :  { %v649_v36 = vpop.f32.mrf.mxu2  ;;  %v805_v38 = vpop.eup %804 }
 0x153   :  { %v374_v60 = vsel %vm372_vm5, %v805_v38, 0.0  ;;  %686 = vst.msk [vmem:[#allocation4 + $0x8] sm:$0xff] %vm33_vm1, %v684_v21  ;;  %v655_v1 = vmul.f32 1.442695, %v649_v36  ;;  %v705_v28 = vld [vmem:[#allocation4] sm:$0xff] }
 0x154   :  { %v375_v19 = vadd.f32 %v374_v60, %v373_v40  ;;  %v707_v53 = vsel %vm33_vm1, %v705_v28, 0.0 }
 0x155   :  { %v807_v41 = vpop.eup %806  ;;  %808 = vpow2.f32 %v655_v1 }
 0x156   :  { %v518_v42 = vsel %vm372_vm5, %v807_v41, 0.0  ;;  %v376_v43 = vrot.slane %v375_v19, 4 }
 0x157   :  { %v519_v44 = vadd.f32 %v518_v42, %v517_v39 }
 0x158   :  { %v377_v14 = vadd.f32 %v376_v43, %v375_v19 }
 0x159   :  { %v520_v11 = vrot.slane %v519_v44, 4 }
 0x15a   :  { %v652_v45 = vpop.f32.mrf.mxu2  ;;  %v378_v48 = vrot.slane %v377_v14, 2  ;;  %v706_v30 = vld [vmem:[#allocation4 + $0x8] sm:$0xff] }
 0x15b   :  { %v521_v49 = vadd.f32 %v520_v11, %v519_v44  ;;  %v657_v50 = vmul.f32 1.442695, %v652_v45  ;;  %v708_v54 = vsel %vm33_vm1, %v706_v30, 0.0  ;;  %v809_v58 = vpop.eup %808 }
 0x15c   :  { %v379_v18 = vadd.f32 %v378_v48, %v377_v14  ;;  %v709_v56 = vadd.f32 %v708_v54, %v707_v53  ;;  %v659_v52 = vsel %vm372_vm5, %v809_v58, 0.0 }
 0x15d   :  { %v522_v0 = vrot.slane %v521_v49, 2  ;;  %810 = vpow2.f32 %v657_v50 }
 0x15e   :  { %v380_v31 = vrot.slane %v379_v18, 1  ;;  %710 = vadd.xlane.f32.xlu0 %v709_v56 }
 0x15f   :  { %v523_v57 = vadd.f32 %v522_v0, %v521_v49 }
 0x160   :  { %v381_v59 = vadd.f32 %v380_v31, %v379_v18 }
 0x161   :  { %v524_v55 = vrot.slane %v523_v57, 1 }
 0x162   :  { %812 = vlog2.f32 %v381_v59 }
 0x163   :  { %v811_v61 = vpop.eup %810  ;;  %v525_v3 = vadd.f32 %v524_v55, %v523_v57 }
 0x164   :  { %v660_v63 = vsel %vm372_vm5, %v811_v61, 0.0 }
 0x165   :  { %v661_v34 = vadd.f32 %v660_v63, %v659_v52  ;;  %814 = vlog2.f32 %v525_v3 }
 0x167   :  { %v662_v4 = vrot.slane %v661_v34, 4 }
 0x168   :  { %v813_v5 = vpop.eup %812 }
 0x169   :  { %v663_v8 = vadd.f32 %v662_v4, %v661_v34  ;;  %v383_v9 = vmul.f32 0.6931472, %v813_v5 }
 0x16b   :  { %v664_v10 = vrot.slane %v663_v8, 2  ;;  %v393_v7 = vadd.f32 %v392_v46, %v383_v9  ;;  %v815_v13 = vpop.eup %814 }
 0x16c   :  { %v527_v27 = vmul.f32 0.6931472, %v815_v13 }
 0x16d   :  { %v665_v47 = vadd.f32 %v664_v10, %v663_v8  ;;  %395 = vst.msk [vmem:[#allocation3] sm:$0x1] %vm31_vm0, %v393_v7 }
 0x16f   :  { %v666_v12 = vrot.slane %v665_v47, 1 }
 0x171   :  { %v667_v15 = vadd.f32 %v666_v12, %v665_v47 }
 0x173   :  { %816 = vlog2.f32 %v667_v15 }
 0x174   :  { %v536_v16 = vld [vmem:[#allocation3] sm:$0x1] }
 0x175   :  { %v537_v17 = vadd.f32 %v536_v16, %v527_v27 }
 0x177   :  { %538 = vst.msk [vmem:[#allocation3] sm:$0x1] %vm31_vm0, %v537_v17 }
 0x179   :  { %v817_v20 = vpop.eup %816 }
 0x17a   :  { %v669_v22 = vmul.f32 0.6931472, %v817_v20 }
 0x17e   :  { %v678_v62 = vld [vmem:[#allocation3] sm:$0x1] }
 0x17f   :  { %v679_v6 = vadd.f32 %v678_v62, %v669_v22 }
 0x181   :  { %680 = vst.msk [vmem:[#allocation3] sm:$0x1] %vm31_vm0, %v679_v6 }
 0x188   :  { %v693_v23 = vld [vmem:[#allocation3] sm:$0x1] }
 0x189   :  { %v694_v24 = vsel %vm31_vm0, %v693_v23, 0.0 }
 0x18a   :  { %695 = vadd.xlane.f32.xlu2 %v694_v24 }
 0x1d1   :  { %v711_v25 = vpop.xlane.xlu0 %710 }
 0x1d2   :  { %v712_v2 = vrot.slane %v711_v25, 4 }
 0x1d4   :  { %v713_v51 = vadd.f32 %v712_v2, %v711_v25 }
 0x1d6   :  { %v714_v29 = vrot.slane %v713_v51, 2 }
 0x1d8   :  { %v715_v35 = vadd.f32 %v714_v29, %v713_v51 }
 0x1da   :  { %v716_v21 = vrot.slane %v715_v35, 1 }
 0x1dc   :  { %v717_v60 = vadd.f32 %v716_v21, %v715_v35 }
 0x1fd   :  { %v696_v32 = vpop.xlane.xlu2 %695 }
 0x1fe   :  { %v697_v33 = vrot.slane %v696_v32, 4 }
 0x200   :  { %v698_v26 = vadd.f32 %v697_v33, %v696_v32 }
 0x202   :  { %v699_v36 = vrot.slane %v698_v26, 2 }
 0x204   :  { %v700_v37 = vadd.f32 %v699_v36, %v698_v26 }
 0x206   :  { %v701_v38 = vrot.slane %v700_v37, 1 }
 0x208   :  { %v702_v40 = vadd.f32 %v701_v38, %v700_v37 }
 0x20a   :  { %759 = vpush %v702_v40 }
 0x20b   :  { %761 = vpush %v717_v60 }
 0x23b   :  { %s760_s0 = spop %759 }
 0x23c   :  { %v704_v41 = vstv %s760_s0  ;;  %s762_s13 = spop %761 }
 0x23d   :  { %v719_v19 = vstv %s762_s13 }
 0x23e   :  { %v720_v39 = vsub.f32 %v704_v41, %v719_v19 }
 0x240   :  { %v721_v42 = vmul.f32 0.020833334, %v720_v39 }
 0x242   :  { %723 = vst.msk [vmem:[#allocation8] sm:$0x1] %vm722_vm6, %v721_v42 }
 0x243   :  { %734 = dma.vmem_to_hbm [thread:$0]  %s730_s15, 16, %s732_s18, [#allocation7]  }
 0x244   :  { %868 = dma.done.wait [#allocation7], 16  }
 0x245   :  { %869 = vsyncadd [#allocation7], 4294967280 }
 0x246   :  { %739 = vsyncpa [#allocation6], 1 }
 0x247   :  { %740 = vsyncpa [#allocation7], 1 }

</bundles_post_ra>
